<compile_context>
chip_gen: v7x
topology: tpu7x:2x2x1
jax: 0.10.0
libtpu: 0.0.40
codegen_flags: <defaults>
</compile_context>

<pallas_src>
import functools
import math

import jax
import jax.numpy as jnp
from jax.experimental import pallas as pl
from jax.experimental.pallas import tpu as pltpu


def _square_var_kernel(var_ref, out_ref, *, offset):
    # Load in native dtype, compute in f32 (correct on v5e's f32-only VPU),
    # store back in the output's native dtype.
    v = var_ref[...].astype(jnp.float32)          # (TILE_R, LANE) tile in VMEM
    out_ref[...] = (v * v + offset).astype(out_ref.dtype)


def square_var_forward(var, offset=0.5):
    """var: jnp array of any shape (the learnable log-variance parameter)."""
    orig_shape = var.shape
    dtype = var.dtype
    flat = var.reshape(-1)
    n = flat.shape[0]

    if n == 0:  # degenerate parameter: nothing to do
        return jnp.zeros(orig_shape, dtype=dtype)

    # ---- lane/sublane-dense slab --------------------------------------------
    # Last dim: multiple of 128 (full lanes).  Second-to-last: multiple of 8
    # (full sublanes).  Tiny parameters pad to one (8, 128) tile; large ones
    # tile the sublane axis with big rows for DMA efficiency.
    LANE = 1024 if n >= 8 * 1024 else 128
    rows = max(1, math.ceil(n / LANE))
    TILE_R = 512 if rows >= 512 else ((rows + 7) // 8) * 8      # multiple of 8
    rows_padded = ((rows + TILE_R - 1) // TILE_R) * TILE_R
    n_padded = rows_padded * LANE

    flat_padded = jnp.pad(flat, (0, n_padded - n))
    slab = flat_padded.reshape(rows_padded, LANE)

    grid = (rows_padded // TILE_R,)
    itemsize = jnp.dtype(dtype).itemsize
    cost = pl.CostEstimate(
        flops=2 * n_padded,
        transcendentals=0,
        bytes_accessed=2 * n_padded * itemsize,
    )

    out = pl.pallas_call(
        functools.partial(_square_var_kernel, offset=float(offset)),
        out_shape=jax.ShapeDtypeStruct(slab.shape, dtype),
        grid=grid,
        in_specs=[pl.BlockSpec((TILE_R, LANE), lambda i: (i, 0))],
        out_specs=pl.BlockSpec((TILE_R, LANE), lambda i: (i, 0)),
        compiler_params=pltpu.CompilerParams(
            dimension_semantics=("parallel",)),
        cost_estimate=cost,
    )(slab)

    # Trim padding and restore the original shape.
    return out.reshape(-1)[:n].reshape(orig_shape)


class SquareVar:
    """JAX/Pallas mirror of the PyTorch SquareVar module."""

    def __init__(self, var_init, min_offset=0.5):
        # Parameter is log(var_init), exactly as in the PyTorch __init__.
        self.var = jnp.log(jnp.asarray(var_init, dtype=jnp.float32))
        self.offset = min_offset

    def __call__(self):
        return square_var_forward(self.var, self.offset)


if __name__ == "__main__":
    key = jax.random.PRNGKey(0)

    # --- shipped shape: tiny 8-dim parameter ---------------------------------
    var_init = jax.random.uniform(key, (8,), minval=0.1, maxval=2.0,
                                  dtype=jnp.float32)
    module = SquareVar(var_init, min_offset=0.5)
    out = jax.block_until_ready(module())
    ref = jnp.log(var_init) ** 2 + 0.5
    assert out.shape == var_init.shape
    assert out.dtype == module.var.dtype
    assert jnp.allclose(out, ref, atol=1e-6), (out, ref)

    # --- non-tile-aligned larger parameter: exercises padding + tiling -------
    key2 = jax.random.PRNGKey(1)
    var_init2 = jax.random.uniform(key2, (5000,), minval=0.1, maxval=2.0,
                                   dtype=jnp.float32)
    module2 = SquareVar(var_init2, min_offset=0.5)
    out2 = jax.block_until_ready(module2())
    ref2 = jnp.log(var_init2) ** 2 + 0.5
    assert out2.shape == var_init2.shape
    assert jnp.allclose(out2, ref2, atol=1e-6)

    print("KERNEL_OK")
</pallas_src>

<mosaic_0001>
module attributes {stable_mosaic.version = 11 : i64} {
  func.func @_square_var_kernel(%arg0: i32, %arg1: memref<8x128xf32, #tpu.memory_space<vmem>>, %arg2: memref<8x128xf32, #tpu.memory_space<vmem>>) attributes {dimension_semantics = [#tpu.dimension_semantics<parallel>], iteration_bounds = array<i64: 1>, scalar_prefetch = 0 : i64, scratch_operands = 0 : i64, tpu.core_type = #tpu.core_type<tc>, window_params = [{transform_indices = @transform_0, window_bounds = array<i64: 8, 128>}, {transform_indices = @transform_1, window_bounds = array<i64: 8, 128>}]} {
    %c0 = arith.constant 0 : index
    %c0_0 = arith.constant 0 : index
    %0 = vector.load %arg1[%c0, %c0_0] : memref<8x128xf32, #tpu.memory_space<vmem>>, vector<8x128xf32>
    %1 = arith.mulf %0, %0 : vector<8x128xf32>
    %cst = arith.constant 5.000000e-01 : f32
    %2 = vector.broadcast %cst : f32 to vector<8x128xf32>
    %3 = arith.addf %1, %2 : vector<8x128xf32>
    %c0_1 = arith.constant 0 : index
    %c0_2 = arith.constant 0 : index
    %4 = vector.load %arg2[%c0_1, %c0_2] : memref<8x128xf32, #tpu.memory_space<vmem>>, vector<8x128xf32>
    tpu.vector_store %arg2[%c0_1, %c0_2], %3 {strides = array<i32>} : memref<8x128xf32, #tpu.memory_space<vmem>>, vector<8x128xf32>,
    return
  }
  func.func @transform_0(%arg0: i32) -> (i32, i32) {
    %c0_i32 = arith.constant 0 : i32
    %c0_i32_0 = arith.constant 0 : i32
    return %arg0, %c0_i32 : i32, i32
  }
  func.func @transform_1(%arg0: i32) -> (i32, i32) {
    %c0_i32 = arith.constant 0 : i32
    %c0_i32_0 = arith.constant 0 : i32
    return %arg0, %c0_i32 : i32, i32
  }
}

</mosaic_0001>

<bundles_post_ra>
// kernel: tpu_custom_call.1
= control target key start
LH: loop header
LB: loop body
LE: loop exit
PB: predicated region body
PF: predicated region fallthrough
CT: control target
= control target key end

     0   :  { %6 = vsyncpa [#allocation3], 0  ;;  %s126_s0 = inlined_call_operand.hbm [shape: f32[8,128], index: 0, kind: input, shape index: {}]   ;;  %s127_s1 = inlined_call_operand.hbm [shape: f32[8,128], index: 1, kind: output, shape index: {}]  }
   0x1   :  { %7 = vsyncpa [#allocation4], 0  ;;  %s90_s6 = smov [#allocation2]   ;;  %s42_s10 = scalar_lea.hbm %s126_s0, 128 }
   0x2   :  { %s14_s7 = sshll.u32 %s90_s6, 4  ;;  %p43_p0 = scmp.ne.s32.totalorder %s126_s0, %s42_s10  ;;  %s15_s7 = int_to_ptr.vmem [resolvable:$true] %s14_s7 }
   0x3   :  { %p46_p1 = scmp.lt.u32.totalorder %s42_s10, %s126_s0 }
   0x5   :  { %p48_p2 = pnand %p46_p1, %p43_p0 }
   0x7   :  { %51 = shalt.err (!%p48_p2)
}
   0x8   :  { %s52_s15 = scalar_lea.vmem %s15_s7, 128  ;;  %p57_p4 = scmp.lt.s32.totalorder %s15_s7, %s15_s7 }
   0x9   :  { %p53_p3 = scmp.ne.s32.totalorder %s15_s7, %s52_s15  ;;  %p58_p5 = scmp.lt.s32.totalorder %s52_s15, %s52_s15 }
   0xb   :  { %p59_p6 = por %p58_p5, %p57_p4 }
   0xd   :  { %p60_p7 = pnand %p59_p6, %p53_p3 }
   0xf   :  { %63 = shalt.err (!%p60_p7)
}
  0x10   :  { %17 = dma.hbm_to_vmem [thread:$0]  %s126_s0, 128, %s15_s7, [#allocation3]  }
  0x11   :  { %86 = dma.done.wait [#allocation3], 128  }
  0x12   :  { %87 = vsyncadd [#allocation3], 4294967168  ;;  %v21_v0 = vld [vmem:[#allocation2] sm:$0xff]  ;;  %s91_s18 = smov [#allocation5]  }
  0x13   :  { %s31_s19 = sshll.u32 %s91_s18, 4  ;;  %v22_v1 = vmul.f32 %v21_v0, %v21_v0  ;;  %s32_s19 = int_to_ptr.vmem [resolvable:$true] %s31_s19 }
  0x14   :  { %s64_s20 = scalar_lea.vmem %s32_s19, 128  ;;  %p69_p9 = scmp.lt.s32.totalorder %s32_s19, %s32_s19 }
  0x15   :  { %v23_v2 = vadd.f32 0.5, %v22_v1  ;;  %p65_p8 = scmp.ne.s32.totalorder %s32_s19, %s64_s20  ;;  %p70_p10 = scmp.lt.s32.totalorder %s64_s20, %s64_s20 }
  0x17   :  { %24 = vst [vmem:[#allocation5] sm:$0xff] %v23_v2  ;;  %p71_p11 = por %p70_p10, %p69_p9 }
  0x19   :  { %p72_p12 = pnand %p71_p11, %p65_p8 }
  0x1b   :  { %75 = shalt.err (!%p72_p12)
}
  0x1c   :  { %s76_s0 = scalar_lea.hbm %s127_s1, 128 }
  0x1d   :  { %p77_p13 = scmp.ne.s32.totalorder %s127_s1, %s76_s0  ;;  %p80_p0 = scmp.lt.u32.totalorder %s76_s0, %s127_s1 }
  0x1f   :  { %p82_p1 = pnand %p80_p0, %p77_p13 }
  0x21   :  { %85 = shalt.err (!%p82_p1)
}
  0x22   :  { %34 = dma.vmem_to_hbm [thread:$0]  %s32_s19, 128, %s127_s1, [#allocation4]  }
  0x23   :  { %88 = dma.done.wait [#allocation4], 128  }
  0x24   :  { %89 = vsyncadd [#allocation4], 4294967168 }
  0x25   :  { %38 = vsyncpa [#allocation3], 1 }
  0x26   :  { %39 = vsyncpa [#allocation4], 1 }

</bundles_post_ra>
